<compile_context>
chip_gen: v7x
topology: tpu7x:2x2x1
jax: 0.10.0
libtpu: 0.0.40
codegen_flags: <defaults>
</compile_context>

<pallas_src>
import functools

import jax
import jax.numpy as jnp
from jax.experimental import pallas as pl
from jax.experimental.pallas import tpu as pltpu  # noqa: F401  (kept for TPU backend parity)

LANES = 128


# ----------------------------- Pallas kernel --------------------------------

def fused_sage_kernel(a_ref, x_ref, w1_ref, b1_ref, w2_ref, b2_ref,
                      fcw_ref, fcb_ref, emb1_ref, emb2_ref, y_ref):
    """Whole SAGE_OneHot forward, everything resident in VMEM.

    a_ref  : (N, N)    row-normalized adjacency (mean aggregation)
    x_ref  : (N, P)    node features, zero lane-padded to P (=128)
    w*_ref : (2P, P)   [W_l^T ; W_r^T] pre-transposed + K-concatenated, zero padded
    b*_ref : (1, P)    lin_l bias, zero padded
    fcw_ref: (1, P)    Linear(hidden, 1) weight row, zero padded
    fcb_ref: (1, 1)    Linear(hidden, 1) bias
    emb1/emb2: (N, P)  conv outputs (padding columns stay exactly zero)
    y_ref  : (N, P)    y broadcast across lanes (lane-dense store); column 0 is y
    """
    a = a_ref[...]
    x = x_ref[...]

    # --- SAGEConv 0: mean-aggregate + merged [lin_l | lin_r] projection + ReLU
    agg1 = jnp.dot(a, x, preferred_element_type=jnp.float32)
    h1 = jnp.dot(jnp.concatenate([agg1, x], axis=-1), w1_ref[...],
                 preferred_element_type=jnp.float32) + b1_ref[...]
    h1 = jnp.maximum(h1, 0.0)                      # relu_ (only between convs)
    emb1_ref[...] = h1

    # --- SAGEConv 1 (last conv -> no ReLU, matching the reference forward)
    agg2 = jnp.dot(a, h1, preferred_element_type=jnp.float32)
    h2 = jnp.dot(jnp.concatenate([agg2, h1], axis=-1), w2_ref[...],
                 preferred_element_type=jnp.float32) + b2_ref[...]
    emb2_ref[...] = h2

    # --- Linear(hidden, 1) head: VPU multiply + lane reduction, lane-dense store
    y = jnp.sum(h2 * fcw_ref[...], axis=-1, keepdims=True) + fcb_ref[...]   # (N, 1)
    y_ref[...] = jnp.broadcast_to(y, y_ref.shape)


# ------------------------------- Wrappers ------------------------------------

def build_mean_adjacency(edge_index, num_nodes):
    """Dense row-normalized adjacency for PyG-style mean aggregation.

    edge_index: (2, E); row 0 = source j, row 1 = target i (messages j -> i).
    Duplicate edges count in both the message sum and the degree (scatter-mean
    semantics); zero in-degree nodes aggregate 0.
    """
    src, dst = edge_index[0], edge_index[1]
    a = jnp.zeros((num_nodes, num_nodes), jnp.float32)
    a = a.at[dst, src].add(1.0)
    deg = a.sum(axis=1, keepdims=True)
    return a / jnp.maximum(deg, 1.0)


def glorot(key, shape):
    fan_out, fan_in = shape
    bound = (6.0 / (fan_in + fan_out)) ** 0.5
    return jax.random.uniform(key, shape, jnp.float32, -bound, bound)


def init_params(key, in_channels, hidden_channels):
    """Logical (PyG-layout) parameters: 2 SAGEConv layers + Linear(hidden, 1)."""
    params = {"convs": []}
    dims = [(in_channels, hidden_channels),
            (hidden_channels, hidden_channels)]
    for fin, fout in dims:
        key, k1, k2 = jax.random.split(key, 3)
        params["convs"].append({
            "w_l": glorot(k1, (fout, fin)),            # lin_l (with bias)
            "b_l": jnp.zeros((fout,), jnp.float32),
            "w_r": glorot(k2, (fout, fin)),            # lin_r (no bias)
        })
    key, kw = jax.random.split(key)
    params["fc_w"] = glorot(kw, (1, hidden_channels))
    params["fc_b"] = jnp.zeros((1,), jnp.float32)
    return params


def pack_params(params, f_pad=LANES):
    """One-time host-side packing: pre-transpose each conv's weights, concatenate
    them along K as [W_l^T ; W_r^T], and zero-pad both K and the output (lane) axis
    to `f_pad` so every in-kernel matmul, concat and store is lane-dense/aligned."""
    def pad_to(a, rows, cols):
        assert a.shape[0] <= rows and a.shape[1] <= cols
        return jnp.pad(a, ((0, rows - a.shape[0]), (0, cols - a.shape[1])))

    packed = {"w": [], "b": []}
    for layer in params["convs"]:
        fout, _ = layer["w_l"].shape
        wl_t = pad_to(layer["w_l"].T, f_pad, f_pad)               # (P, P)
        wr_t = pad_to(layer["w_r"].T, f_pad, f_pad)               # (P, P)
        packed["w"].append(jnp.concatenate([wl_t, wr_t], axis=0))  # (2P, P)
        packed["b"].append(pad_to(layer["b_l"].reshape(1, fout), 1, f_pad))
    packed["fc_w"] = pad_to(params["fc_w"], 1, f_pad)             # (1, P)
    packed["fc_b"] = params["fc_b"].reshape(1, 1)                 # (1, 1)
    return packed


@functools.partial(jax.jit, static_argnums=(3, 4))
def sage_onehot_forward(packed, x, edge_index, hidden, f_pad):
    """Forward pass matching SAGE_OneHot.forward -> (y, [emb0, emb1])."""
    n = x.shape[0]
    xf = x.reshape(n, -1).astype(jnp.float32)          # x.flatten(start_dim=1)
    xf = jnp.pad(xf, ((0, 0), (0, f_pad - xf.shape[1])))
    a_norm = build_mean_adjacency(edge_index, n)

    emb1_p, emb2_p, y_slab = pl.pallas_call(
        fused_sage_kernel,
        out_shape=(
            jax.ShapeDtypeStruct((n, f_pad), jnp.float32),
            jax.ShapeDtypeStruct((n, f_pad), jnp.float32),
            jax.ShapeDtypeStruct((n, f_pad), jnp.float32),
        ),
    )(a_norm, xf, packed["w"][0], packed["b"][0],
      packed["w"][1], packed["b"][1], packed["fc_w"], packed["fc_b"])

    # Slice lane padding back off (layout plumbing; stays inside the jit).
    return y_slab[:, 0], [emb1_p[:, :hidden], emb2_p[:, :hidden]]


# ----------------------------- Pure-JAX reference ----------------------------

def reference_forward(params, x, edge_index):
    n = x.shape[0]
    h = x.reshape(n, -1).astype(jnp.float32)
    a = build_mean_adjacency(edge_index, n)
    hp = jax.lax.Precision.HIGHEST
    embs = []
    for i, layer in enumerate(params["convs"]):
        agg = jnp.dot(a, h, precision=hp)
        h = (jnp.dot(agg, layer["w_l"].T, precision=hp)
             + jnp.dot(h, layer["w_r"].T, precision=hp)
             + layer["b_l"])
        if i < len(params["convs"]) - 1:
            h = jnp.maximum(h, 0.0)
        embs.append(h)
    y = (jnp.dot(h, params["fc_w"].T, precision=hp) + params["fc_b"]).squeeze(-1)
    return y, embs


# --------------------------------- Main ---------------------------------------

if __name__ == "__main__":
    key = jax.random.PRNGKey(0)

    N = 16                 # nodes
    IN_CHANNELS = 32       # after flatten(start_dim=1): (N, 4, 8) -> (N, 32)
    HIDDEN = 32
    E = 48                 # edges
    F_PAD = LANES          # features/hidden zero-padded to 128 lanes

    key, kx, ke, kp = jax.random.split(key, 4)
    x = jax.random.normal(kx, (N, 4, 8), jnp.float32)
    edge_index = jax.random.randint(ke, (2, E), 0, N, jnp.int32)

    params = init_params(kp, IN_CHANNELS, HIDDEN)
    packed = pack_params(params, F_PAD)

    y, embeddings = sage_onehot_forward(packed, x, edge_index, HIDDEN, F_PAD)
    jax.block_until_ready(y)
    for e in embeddings:
        jax.block_until_ready(e)

    assert y.shape == (N,)
    assert len(embeddings) == 2
    assert all(e.shape == (N, HIDDEN) for e in embeddings)

    # Sanity check against the pure-JAX reference of the PyTorch module.
    y_ref, emb_ref = reference_forward(params, x, edge_index)
    assert jnp.allclose(y, y_ref, rtol=5e-2, atol=5e-2)
    for e, er in zip(embeddings, emb_ref):
        assert jnp.allclose(e, er, rtol=5e-2, atol=5e-2)

    # TODO(synk): SAGE_OneHot.inference (subgraph_loader mini-batching + amp
    # autocast) is host-side data-loader logic with no Pallas equivalent.
    print("KERNEL_OK")
</pallas_src>

<mosaic_0001>
module attributes {stable_mosaic.version = 11 : i64} {
  func.func private @main(%arg0: i32) attributes {dimension_semantics = [#tpu.dimension_semantics<core_parallel>], iteration_bounds = array<i64: 2>, tpu.core_type = #tpu.core_type<sc_scalar_subcore>, window_params = []} {
    return
  }
}

module attributes {stable_mosaic.version = 11 : i64} {
  func.func private @main(%arg0: i32) attributes {dimension_semantics = [#tpu.dimension_semantics<core_parallel>], iteration_bounds = array<i64: 2>, tpu.core_type = #tpu.core_type<sc_scalar_subcore>, window_params = []} {
    return
  }
}

module attributes {stable_mosaic.version = 11 : i64} {
  func.func @fused_sage_kernel(%arg0: memref<16x16xf32, #tpu.memory_space<vmem>>, %arg1: memref<16x128xf32, #tpu.memory_space<vmem>>, %arg2: memref<256x128xf32, #tpu.memory_space<vmem>>, %arg3: memref<1x128xf32, #tpu.memory_space<vmem>>, %arg4: memref<256x128xf32, #tpu.memory_space<vmem>>, %arg5: memref<1x128xf32, #tpu.memory_space<vmem>>, %arg6: memref<1x128xf32, #tpu.memory_space<vmem>>, %arg7: memref<1x1xf32, #tpu.memory_space<vmem>>, %arg8: memref<16x128xf32, #tpu.memory_space<vmem>>, %arg9: memref<16x128xf32, #tpu.memory_space<vmem>>, %arg10: memref<16x128xf32, #tpu.memory_space<vmem>>) attributes {dimension_semantics = [], scalar_prefetch = 0 : i64, scratch_operands = 0 : i64, tpu.core_type = #tpu.core_type<tc>} {
    %c0 = arith.constant 0 : index
    %c0_0 = arith.constant 0 : index
    %0 = vector.load %arg0[%c0, %c0_0] : memref<16x16xf32, #tpu.memory_space<vmem>>, vector<16x16xf32>
    %c0_1 = arith.constant 0 : index
    %c0_2 = arith.constant 0 : index
    %1 = vector.load %arg1[%c0_1, %c0_2] : memref<16x128xf32, #tpu.memory_space<vmem>>, vector<16x128xf32>
    %cst = arith.constant dense<0.000000e+00> : vector<16x128xf32>
    %2 = tpu.matmul %0, %1, %cst {dimension_numbers = #tpu.dot_dimension_numbers<[1], [0], [0], [1], [0, 0, 1, 1], [], []>} : vector<16x16xf32>, vector<16x128xf32>, vector<16x128xf32> -> vector<16x128xf32>
    %3 = tpu.concatenate %2, %1 in 1 : vector<16x128xf32>, vector<16x128xf32> -> vector<16x256xf32>
    %c0_3 = arith.constant 0 : index
    %c0_4 = arith.constant 0 : index
    %4 = vector.load %arg2[%c0_3, %c0_4] : memref<256x128xf32, #tpu.memory_space<vmem>>, vector<256x128xf32>
    %cst_5 = arith.constant dense<0.000000e+00> : vector<16x128xf32>
    %5 = tpu.matmul %3, %4, %cst_5 {dimension_numbers = #tpu.dot_dimension_numbers<[1], [0], [0], [1], [0, 0, 1, 1], [], []>} : vector<16x256xf32>, vector<256x128xf32>, vector<16x128xf32> -> vector<16x128xf32>
    %c0_6 = arith.constant 0 : index
    %c0_7 = arith.constant 0 : index
    %6 = vector.load %arg3[%c0_6, %c0_7] : memref<1x128xf32, #tpu.memory_space<vmem>>, vector<1x128xf32>
    %7 = vector.broadcast %6 : vector<1x128xf32> to vector<16x128xf32>
    %8 = arith.addf %5, %7 : vector<16x128xf32>
    %cst_8 = arith.constant 0.000000e+00 : f32
    %9 = vector.broadcast %cst_8 : f32 to vector<16x128xf32>
    %10 = arith.maximumf %8, %9 : vector<16x128xf32>
    %c0_9 = arith.constant 0 : index
    %c0_10 = arith.constant 0 : index
    %11 = vector.load %arg8[%c0_9, %c0_10] : memref<16x128xf32, #tpu.memory_space<vmem>>, vector<16x128xf32>
    tpu.vector_store %arg8[%c0_9, %c0_10], %10 {strides = array<i32>} : memref<16x128xf32, #tpu.memory_space<vmem>>, vector<16x128xf32>,
    %cst_11 = arith.constant dense<0.000000e+00> : vector<16x128xf32>
    %12 = tpu.matmul %0, %10, %cst_11 {dimension_numbers = #tpu.dot_dimension_numbers<[1], [0], [0], [1], [0, 0, 1, 1], [], []>} : vector<16x16xf32>, vector<16x128xf32>, vector<16x128xf32> -> vector<16x128xf32>
    %13 = tpu.concatenate %12, %10 in 1 : vector<16x128xf32>, vector<16x128xf32> -> vector<16x256xf32>
    %c0_12 = arith.constant 0 : index
    %c0_13 = arith.constant 0 : index
    %14 = vector.load %arg4[%c0_12, %c0_13] : memref<256x128xf32, #tpu.memory_space<vmem>>, vector<256x128xf32>
    %cst_14 = arith.constant dense<0.000000e+00> : vector<16x128xf32>
    %15 = tpu.matmul %13, %14, %cst_14 {dimension_numbers = #tpu.dot_dimension_numbers<[1], [0], [0], [1], [0, 0, 1, 1], [], []>} : vector<16x256xf32>, vector<256x128xf32>, vector<16x128xf32> -> vector<16x128xf32>
    %c0_15 = arith.constant 0 : index
    %c0_16 = arith.constant 0 : index
    %16 = vector.load %arg5[%c0_15, %c0_16] : memref<1x128xf32, #tpu.memory_space<vmem>>, vector<1x128xf32>
    %17 = vector.broadcast %16 : vector<1x128xf32> to vector<16x128xf32>
    %18 = arith.addf %15, %17 : vector<16x128xf32>
    %c0_17 = arith.constant 0 : index
    %c0_18 = arith.constant 0 : index
    %19 = vector.load %arg9[%c0_17, %c0_18] : memref<16x128xf32, #tpu.memory_space<vmem>>, vector<16x128xf32>
    tpu.vector_store %arg9[%c0_17, %c0_18], %18 {strides = array<i32>} : memref<16x128xf32, #tpu.memory_space<vmem>>, vector<16x128xf32>,
    %c0_19 = arith.constant 0 : index
    %c0_20 = arith.constant 0 : index
    %20 = vector.load %arg6[%c0_19, %c0_20] : memref<1x128xf32, #tpu.memory_space<vmem>>, vector<1x128xf32>
    %21 = vector.broadcast %20 : vector<1x128xf32> to vector<16x128xf32>
    %22 = arith.mulf %18, %21 : vector<16x128xf32>
    %cst_21 = arith.constant dense<0.000000e+00> : vector<16xf32>
    %23 = vector.multi_reduction <add>, %22, %cst_21 [1] : vector<16x128xf32> to vector<16xf32>
    %24 = vector.shape_cast %23 : vector<16xf32> to vector<16x1xf32>
    %c0_22 = arith.constant 0 : index
    %c0_23 = arith.constant 0 : index
    %25 = vector.load %arg7[%c0_22, %c0_23] : memref<1x1xf32, #tpu.memory_space<vmem>>, vector<1x1xf32>
    %26 = vector.broadcast %25 : vector<1x1xf32> to vector<16x1xf32>
    %27 = arith.addf %24, %26 : vector<16x1xf32>
    %28 = vector.shape_cast %27 : vector<16x1xf32> to vector<16x1xf32>
    %29 = vector.broadcast %28 : vector<16x1xf32> to vector<16x128xf32>
    %c0_24 = arith.constant 0 : index
    %c0_25 = arith.constant 0 : index
    %30 = vector.load %arg10[%c0_24, %c0_25] : memref<16x128xf32, #tpu.memory_space<vmem>>, vector<16x128xf32>
    tpu.vector_store %arg10[%c0_24, %c0_25], %29 {strides = array<i32>} : memref<16x128xf32, #tpu.memory_space<vmem>>, vector<16x128xf32>,
    return
  }
}

</mosaic_0001>

<bundles_post_ra>
// kernel: sage_onehot_forward.1
= control target key start
LH: loop header
LB: loop body
LE: loop exit
PB: predicated region body
PF: predicated region fallthrough
CT: control target
= control target key end

     0   :  { %s1064_s0 = inlined_call_operand.vmem [shape: f32[16,16], index: 0, kind: input, shape index: {}]   ;;  %s1065_s1 = inlined_call_operand.vmem [shape: f32[16,128], index: 1, kind: input, shape index: {}]   ;;  %s1066_s2 = inlined_call_operand.vmem [shape: f32[256,128], index: 2, kind: input, shape index: {}]   ;;  %s1067_s3 = inlined_call_operand.vmem [shape: f32[1,128], index: 3, kind: input, shape index: {}]   ;;  %s1068_s4 = inlined_call_operand.vmem [shape: f32[256,128], index: 4, kind: input, shape index: {}]   ;;  %s1069_s5 = inlined_call_operand.vmem [shape: f32[1,128], index: 5, kind: input, shape index: {}]   ;;  %s1070_s6 = inlined_call_operand.vmem [shape: f32[1,128], index: 6, kind: input, shape index: {}]   ;;  %s1071_s7 = inlined_call_operand.<no memory space> [shape: f32[1,1], index: 7, kind: input, shape index: {}]   ;;  %s1072_s8 = inlined_call_operand.hbm [shape: f32[16,128], index: 8, kind: output, shape index: {0}]   ;;  %s1073_s9 = inlined_call_operand.hbm [shape: f32[16,128], index: 9, kind: output, shape index: {1}]   ;;  %s1074_s10 = inlined_call_operand.vmem [shape: f32[16,128], index: 10, kind: output, shape index: {2}]  }
   0x1   :  { %v16_v0 = vstv %s1071_s7 }
   0x2   :  { %17 = vst [vmem:[#allocation2] sm:$0x1] %v16_v0 }
   0x3   :  { %18 = vsyncpa [#allocation4], 0  ;;  %v38_v1 = vld [vmem:[%s1065_s1] sm:$0xff]  ;;  %v803_v2 = vld [vmem:[%s1065_s1 + $0x8] sm:$0xff]  ;;  %vm40_vm0 = vcmask 130048  }
   0x4   :  { %v36_v3 = vld [vmem:[%s1064_s0] sm:$0xff]  ;;  %v607_v4 = vpack.c.bf16 %v803_v2, %v38_v1  ;;  %v139_v6 = vld [vmem:[%s1066_s2 + $0x88] sm:$0xff]  ;;  %v140_v10 = vld [vmem:[%s1066_s2 + $0x90] sm:$0xff] }
   0x5   :  { %597 = vmatprep.mubr.msk.f32.mxu1 %vm40_vm0, %v36_v3  ;;  %v138_v5 = vld [vmem:[%s1066_s2 + $0x80] sm:$0xff]  ;;  %604 = vmatprep.mubr.msk.f32.mxu0 %vm40_vm0, %v36_v3  ;;  %v123_v9 = vld [vmem:[%s1066_s2 + $0x8] sm:$0xff]  ;;  %v141_v11 = vld [vmem:[%s1066_s2 + $0x98] sm:$0xff] }
   0x6   :  { %v611_v7 = vpack.c.bf16 %v139_v6, %v138_v5  ;;  %v122_v8 = vld [vmem:[%s1066_s2] sm:$0xff]  ;;  %608 = vmatprep.subr.bf16.mxu1 %v607_v4  ;;  %v832_v12 = vld [vmem:[%s1064_s0 + $0x8] sm:$0xff]  ;;  %v615_v14 = vpack.c.bf16 %v141_v11, %v140_v10  ;;  %v124_v15 = vld [vmem:[%s1066_s2 + $0x10] sm:$0xff] }
   0x7   :  { %610 = vmatpush3.bf16.msra.mxu1 %v607_v4  ;;  %v613_v13 = vpack.c.bf16 %v123_v9, %v122_v8  ;;  %v125_v16 = vld [vmem:[%s1066_s2 + $0x18] sm:$0xff]  ;;  %v142_v17 = vld [vmem:[%s1066_s2 + $0xa0] sm:$0xff]  ;;  %v143_v18 = vld [vmem:[%s1066_s2 + $0xa8] sm:$0xff] }
   0x8   :  { %612 = vmatprep.subr.bf16.mxu1 %v611_v7  ;;  %v617_v19 = vpack.c.bf16 %v125_v16, %v124_v15  ;;  %v619_v20 = vpack.c.bf16 %v143_v18, %v142_v17  ;;  %v126_v21 = vld [vmem:[%s1066_s2 + $0x20] sm:$0xff]  ;;  %v127_v22 = vld [vmem:[%s1066_s2 + $0x28] sm:$0xff]  ;;  %v144_v23 = vld [vmem:[%s1066_s2 + $0xb0] sm:$0xff] }
   0x9   :  { %v145_v24 = vld [vmem:[%s1066_s2 + $0xb8] sm:$0xff]  ;;  %v621_v25 = vpack.c.bf16 %v127_v22, %v126_v21 }
   0xa   :  { %598 = vmatmul.mubr.msk.f32.vlgmr.msra.gmra.mrb[0].mxu1 %vm40_vm0, %v832_v12 }
   0xb   :  { %614 = vmatpush3.bf16.msra.mxu1 %v613_v13  ;;  %225 = vmatprep.mubr.f32.mxu1 %v38_v1 }
   0xc   :  { %616 = vmatprep.subr.bf16.mxu1 %v615_v14 }
   0xf   :  { %618 = vmatpush3.bf16.msra.mxu1 %v617_v19 }
  0x10   :  { %19 = vsyncpa [#allocation6], 0  ;;  %620 = vmatprep.subr.bf16.mxu1 %v619_v20  ;;  %v623_v26 = vpack.c.bf16 %v145_v24, %v144_v23  ;;  %v128_v27 = vld [vmem:[%s1066_s2 + $0x30] sm:$0xff]  ;;  %v129_v28 = vld [vmem:[%s1066_s2 + $0x38] sm:$0xff] }
  0x11   :  { %v146_v29 = vld [vmem:[%s1066_s2 + $0xc0] sm:$0xff]  ;;  %v147_v30 = vld [vmem:[%s1066_s2 + $0xc8] sm:$0xff]  ;;  %v625_v31 = vpack.c.bf16 %v129_v28, %v128_v27  ;;  %v148_v35 = vld [vmem:[%s1066_s2 + $0xd0] sm:$0xff] }
  0x12   :  { %v627_v32 = vpack.c.bf16 %v147_v30, %v146_v29  ;;  %v130_v33 = vld [vmem:[%s1066_s2 + $0x40] sm:$0xff]  ;;  %v131_v34 = vld [vmem:[%s1066_s2 + $0x48] sm:$0xff]  ;;  %v149_v36 = vld [vmem:[%s1066_s2 + $0xd8] sm:$0xff] }
  0x13   :  { %622 = vmatpush3.bf16.msra.mxu1 %v621_v25  ;;  %v629_v37 = vpack.c.bf16 %v131_v34, %v130_v33  ;;  %v631_v38 = vpack.c.bf16 %v149_v36, %v148_v35  ;;  %v132_v39 = vld [vmem:[%s1066_s2 + $0x50] sm:$0xff]  ;;  %v133_v40 = vld [vmem:[%s1066_s2 + $0x58] sm:$0xff]  ;;  %v150_v41 = vld [vmem:[%s1066_s2 + $0xe0] sm:$0xff] }
  0x14   :  { %624 = vmatprep.subr.bf16.mxu1 %v623_v26  ;;  %v151_v42 = vld [vmem:[%s1066_s2 + $0xe8] sm:$0xff]  ;;  %v633_v43 = vpack.c.bf16 %v133_v40, %v132_v39  ;;  %v134_v45 = vld [vmem:[%s1066_s2 + $0x60] sm:$0xff]  ;;  %v152_v47 = vld [vmem:[%s1066_s2 + $0xf0] sm:$0xff] }
  0x15   :  { %v635_v44 = vpack.c.bf16 %v151_v42, %v150_v41  ;;  %v135_v46 = vld [vmem:[%s1066_s2 + $0x68] sm:$0xff]  ;;  %v153_v48 = vld [vmem:[%s1066_s2 + $0xf8] sm:$0xff]  ;;  %v136_v51 = vld [vmem:[%s1066_s2 + $0x70] sm:$0xff] }
  0x16   :  { %v637_v49 = vpack.c.bf16 %v135_v46, %v134_v45  ;;  %v639_v50 = vpack.c.bf16 %v153_v48, %v152_v47  ;;  %v137_v52 = vld [vmem:[%s1066_s2 + $0x78] sm:$0xff]  ;;  %v503_v57 = vld [vmem:[%s1067_s3] ss:$0 sm:$0xff]  ;;  %v316_v8 = vld [vmem:[%s1068_s4 + $0x8] sm:$0xff] }
  0x17   :  { %626 = vmatpush3.bf16.msra.mxu1 %v625_v31  ;;  %v641_v53 = vpack.c.bf16 %v137_v52, %v136_v51  ;;  %v331_v3 = vld [vmem:[%s1068_s4 + $0x80] sm:$0xff]  ;;  %v333_v9 = vld [vmem:[%s1068_s4 + $0x90] sm:$0xff]  ;;  %v334_v10 = vld [vmem:[%s1068_s4 + $0x98] sm:$0xff] }
  0x18   :  { %628 = vmatprep.subr.bf16.mxu1 %v627_v32  ;;  %v315_v7 = vld [vmem:[%s1068_s4] sm:$0xff]  ;;  %v651_v13 = vpack.c.bf16 %v334_v10, %v333_v9  ;;  %v317_v14 = vld [vmem:[%s1068_s4 + $0x10] sm:$0xff]  ;;  %v318_v15 = vld [vmem:[%s1068_s4 + $0x18] sm:$0xff] }
  0x19   :  { %v649_v11 = vpack.c.bf16 %v316_v8, %v315_v7  ;;  %v335_v16 = vld [vmem:[%s1068_s4 + $0xa0] sm:$0xff]  ;;  %v336_v17 = vld [vmem:[%s1068_s4 + $0xa8] sm:$0xff]  ;;  %v653_v18 = vpack.c.bf16 %v318_v15, %v317_v14  ;;  %v337_v22 = vld [vmem:[%s1068_s4 + $0xb0] sm:$0xff] }
  0x1a   :  { %v655_v19 = vpack.c.bf16 %v336_v17, %v335_v16  ;;  %v319_v20 = vld [vmem:[%s1068_s4 + $0x20] sm:$0xff]  ;;  %v320_v21 = vld [vmem:[%s1068_s4 + $0x28] sm:$0xff]  ;;  %v321_v25 = vld [vmem:[%s1068_s4 + $0x30] sm:$0xff] }
  0x1b   :  { %630 = vmatpush3.bf16.msra.mxu1 %v629_v37  ;;  %v657_v23 = vpack.c.bf16 %v320_v21, %v319_v20  ;;  %v322_v26 = vld [vmem:[%s1068_s4 + $0x38] sm:$0xff]  ;;  %v339_v27 = vld [vmem:[%s1068_s4 + $0xc0] sm:$0xff]  ;;  %v340_v28 = vld [vmem:[%s1068_s4 + $0xc8] sm:$0xff] }
  0x1c   :  { %632 = vmatprep.subr.bf16.mxu1 %v631_v38  ;;  %v661_v29 = vpack.c.bf16 %v322_v26, %v321_v25  ;;  %v663_v30 = vpack.c.bf16 %v340_v28, %v339_v27  ;;  %v323_v31 = vld [vmem:[%s1068_s4 + $0x40] sm:$0xff]  ;;  %v324_v32 = vld [vmem:[%s1068_s4 + $0x48] sm:$0xff]  ;;  %v341_v33 = vld [vmem:[%s1068_s4 + $0xd0] sm:$0xff] }
  0x1d   :  { %v342_v34 = vld [vmem:[%s1068_s4 + $0xd8] sm:$0xff]  ;;  %v665_v35 = vpack.c.bf16 %v324_v32, %v323_v31  ;;  %v325_v37 = vld [vmem:[%s1068_s4 + $0x50] sm:$0xff]  ;;  %v343_v39 = vld [vmem:[%s1068_s4 + $0xe0] sm:$0xff] }
  0x1e   :  { %v667_v36 = vpack.c.bf16 %v342_v34, %v341_v33  ;;  %v326_v38 = vld [vmem:[%s1068_s4 + $0x58] sm:$0xff]  ;;  %v344_v40 = vld [vmem:[%s1068_s4 + $0xe8] sm:$0xff]  ;;  %v345_v45 = vld [vmem:[%s1068_s4 + $0xf0] sm:$0xff] }
  0x1f   :  { %634 = vmatpush3.bf16.msra.mxu1 %v633_v43  ;;  %v669_v41 = vpack.c.bf16 %v326_v38, %v325_v37  ;;  %v671_v42 = vpack.c.bf16 %v344_v40, %v343_v39  ;;  %v327_v43 = vld [vmem:[%s1068_s4 + $0x60] sm:$0xff]  ;;  %v346_v46 = vld [vmem:[%s1068_s4 + $0xf8] sm:$0xff] }
  0x20   :  { %636 = vmatprep.subr.bf16.mxu1 %v635_v44  ;;  %v328_v44 = vld [vmem:[%s1068_s4 + $0x68] sm:$0xff]  ;;  %v675_v48 = vpack.c.bf16 %v346_v46, %v345_v45 }
  0x21   :  { %v673_v47 = vpack.c.bf16 %v328_v44, %v327_v43 }
  0x23   :  { %638 = vmatpush3.bf16.msra.mxu1 %v637_v49  ;;  %v329_v49 = vld [vmem:[%s1068_s4 + $0x70] sm:$0xff] }
  0x24   :  { %640 = vmatprep.subr.bf16.mxu1 %v639_v50  ;;  %v330_v50 = vld [vmem:[%s1068_s4 + $0x78] sm:$0xff] }
  0x25   :  { %v677_v51 = vpack.c.bf16 %v330_v50, %v329_v49 }
  0x27   :  { %642 = vmatpush3.bf16.msra.mxu1 %v641_v53 }
  0xdd   :  { %v599_v54 = vpop.f32.mrb[0].mxu1 }
  0xde   :  { %v113_v55 = vpop.f32.mrb[1].mxu1 }
  0xdf   :  { %226 = vmatmul.mubr.f32.vlgmr.msra.gmra.mrb[2].mxu1 %v113_v55 }
  0xe0   :  { %230 = vmatprep.mubr.f32.mxu1 %v803_v2  ;;  %v332_v2 = vld [vmem:[%s1068_s4 + $0x88] sm:$0xff] }
  0xe1   :  { %v647_v6 = vpack.c.bf16 %v332_v2, %v331_v3  ;;  %v734_v3 = vmov 0   ;;  %v508_v2 = vld [vmem:[#allocation2] ss:$0 sm:$0xff] }
  0xe2   :  { %684 = vset.pattern.permute.xlu1 %v734_v3  ;;  %685 = vset.pattern.permute.xlu0 %v734_v3 }
  0xe3   :  { %231 = vmatmul.mubr.f32.gmra.mrb[4].mxu1 %v599_v54 }
 0x1b2   :  { %v545_v56 = vpop.f32.mrb[2].mxu1 }
 0x1b3   :  { %v546_v58 = vpop.f32.mrb[3].mxu1 }
 0x1b4   :  { %v547_v59 = vadd.f32 %v546_v58, %v545_v56  ;;  %v506_v56 = vld [vmem:[%s1069_s5] ss:$0 sm:$0xff] }
 0x1b5   :  { %v507_v58 = vld [vmem:[%s1070_s6] ss:$0 sm:$0xff]  ;;  %s736_s6 = smov [#allocation5]  }
 0x1b6   :  { %v228_v60 = vadd.f32 %v547_v59, %v503_v57  ;;  %v548_v61 = vpop.f32.mrb[4].mxu1  ;;  %s482_s14 = sshll.u32 %s736_s6, 4  ;;  %s1027_s14 = int_to_ptr.vmem [resolvable:$true] %s482_s14 }
 0x1b7   :  { %v549_v62 = vpop.f32.mrb[5].mxu1 }
 0x1b8   :  { %v236_v63 = vmax.f32 %v228_v60, 0.0  ;;  %v550_v0 = vadd.f32 %v549_v62, %v548_v61 }
 0x1ba   :  { %238 = vst [vmem:[#allocation3] sm:$0xff] %v236_v63  ;;  %v233_v1 = vadd.f32 %v550_v0, %v503_v57 }
 0x1bc   :  { %v924_v4 = vmax.f32 %v233_v1, 0.0 }
 0x1be   :  { %239 = vst [vmem:[#allocation3 + $0x8] sm:$0xff] %v924_v4  ;;  %v643_v5 = vpack.c.bf16 %v924_v4, %v236_v63 }
 0x1c0   :  { %644 = vmatprep.subr.bf16.mxu0 %v643_v5 }
 0x1c1   :  { %646 = vmatpush3.bf16.msra.mxu0 %v643_v5 }
 0x1c2   :  { %648 = vmatprep.subr.bf16.mxu0 %v647_v6 }
 0x1c4   :  { %605 = vmatmul.mubr.msk.f32.vlgmr.msra.gmra.mrb[0].mxu0 %vm40_vm0, %v832_v12  ;;  %v338_v12 = vld [vmem:[%s1068_s4 + $0xb8] sm:$0xff]  ;;  %s735_s4 = smov [#allocation3]  }
 0x1c5   :  { %418 = vmatprep.mubr.f32.mxu0 %v236_v63  ;;  %650 = vmatpush3.bf16.msra.mxu0 %v649_v11  ;;  %v659_v24 = vpack.c.bf16 %v338_v12, %v337_v22  ;;  %s470_s5 = sshll.u32 %s735_s4, 4  ;;  %s471_s5 = int_to_ptr.vmem [resolvable:$true] %s470_s5 }
 0x1c6   :  { %652 = vmatprep.subr.bf16.mxu0 %v651_v13  ;;  %s686_s15 = scalar_lea.vmem %s471_s5, 256  ;;  %p691_p1 = scmp.lt.s32.totalorder %s471_s5, %s471_s5 }
 0x1c7   :  { %p687_p0 = scmp.ne.s32.totalorder %s471_s5, %s686_s15  ;;  %p692_p2 = scmp.lt.s32.totalorder %s686_s15, %s686_s15 }
 0x1c9   :  { %654 = vmatpush3.bf16.msra.mxu0 %v653_v18  ;;  %p693_p3 = por %p692_p2, %p691_p1 }
 0x1ca   :  { %656 = vmatprep.subr.bf16.mxu0 %v655_v19 }
 0x1cb   :  { %p694_p4 = pnand %p693_p3, %p687_p0 }
 0x1cd   :  { %658 = vmatpush3.bf16.msra.mxu0 %v657_v23 }
 0x1ce   :  { %660 = vmatprep.subr.bf16.mxu0 %v659_v24 }
 0x1d1   :  { %662 = vmatpush3.bf16.msra.mxu0 %v661_v29 }
 0x1d2   :  { %664 = vmatprep.subr.bf16.mxu0 %v663_v30 }
 0x1d5   :  { %666 = vmatpush3.bf16.msra.mxu0 %v665_v35 }
 0x1d6   :  { %668 = vmatprep.subr.bf16.mxu0 %v667_v36 }
 0x1d9   :  { %670 = vmatpush3.bf16.msra.mxu0 %v669_v41 }
 0x1da   :  { %672 = vmatprep.subr.bf16.mxu0 %v671_v42 }
 0x1dd   :  { %674 = vmatpush3.bf16.msra.mxu0 %v673_v47 }
 0x1de   :  { %676 = vmatprep.subr.bf16.mxu0 %v675_v48 }
 0x1e1   :  { %678 = vmatpush3.bf16.msra.mxu0 %v677_v51 }
 0x297   :  { %v606_v52 = vpop.f32.mrb[0].mxu0 }
 0x298   :  { %v306_v53 = vpop.f32.mrb[1].mxu0 }
 0x299   :  { %419 = vmatmul.mubr.f32.vlgmr.msra.gmra.mrb[2].mxu0 %v306_v53 }
 0x29a   :  { %423 = vmatprep.mubr.f32.mxu0 %v924_v4 }
 0x29d   :  { %424 = vmatmul.mubr.f32.gmra.mrb[4].mxu0 %v606_v52 }
 0x36c   :  { %v587_v54 = vpop.f32.mrb[2].mxu0 }
 0x36d   :  { %v588_v55 = vpop.f32.mrb[3].mxu0 }
 0x36e   :  { %v589_v57 = vadd.f32 %v588_v55, %v587_v54 }
 0x370   :  { %v590_v59 = vpop.f32.mrb[4].mxu0  ;;  %v421_v60 = vadd.f32 %v589_v57, %v506_v56 }
 0x371   :  { %v591_v61 = vpop.f32.mrb[5].mxu0 }
 0x372   :  { %v592_v62 = vadd.f32 %v591_v61, %v590_v59  ;;  %v438_v63 = vmul.f32 %v507_v58, %v421_v60  ;;  %429 = vst [vmem:[#allocation5] sm:$0xff] %v421_v60 }
 0x374   :  { %v426_v0 = vadd.f32 %v592_v62, %v506_v56  ;;  %440 = vadd.xlane.f32.xlu0 %v438_v63 }
 0x376   :  { %430 = vst [vmem:[#allocation5 + $0x8] sm:$0xff] %v426_v0  ;;  %v439_v1 = vmul.f32 %v507_v58, %v426_v0 }
 0x378   :  { %442 = vadd.xlane.f32.xlu0 %v439_v1 }
 0x401   :  { %v441_v4 = vpop.xlane.xlu0 %440 }
 0x402   :  { %v451_v5 = vadd.f32 %v508_v2, %v441_v4 }
 0x404   :  { %455 = vperm.xlu1 %684, %v451_v5  }
 0x405   :  { %v443_v6 = vpop.xlane.xlu0 %442 }
 0x406   :  { %v452_v7 = vadd.f32 %v508_v2, %v443_v6 }
 0x408   :  { %460 = vperm.xlu1 %684, %v452_v7  }
 0x409   :  { %697 = shalt.err (!%p694_p4)
}
 0x40a   :  { %s698_s18 = scalar_lea.hbm %s1072_s8, 256 }
 0x40b   :  { %p699_p5 = scmp.ne.s32.totalorder %s1072_s8, %s698_s18  ;;  %p702_p6 = scmp.lt.u32.totalorder %s698_s18, %s1072_s8 }
 0x40d   :  { %p704_p7 = pnand %p702_p6, %p699_p5 }
 0x40f   :  { %707 = shalt.err (!%p704_p7)
}
 0x410   :  { %s737_s7 = smov 128   ;;  %s738_s21 = smov 8  }
 0x411   :  { %476 = dma.vmem_to_hbm [thread:$0]  %s471_s5, 256, %s1072_s8, [#allocation4], %s737_s7, %s737_s7, %s738_s21  }
 0x412   :  { %s708_s23 = scalar_lea.vmem %s1027_s14, 256  ;;  %p713_p9 = scmp.lt.s32.totalorder %s1027_s14, %s1027_s14 }
 0x413   :  { %p709_p8 = scmp.ne.s32.totalorder %s1027_s14, %s708_s23  ;;  %p714_p10 = scmp.lt.s32.totalorder %s708_s23, %s708_s23 }
 0x415   :  { %p715_p11 = por %p714_p10, %p713_p9 }
 0x417   :  { %p716_p12 = pnand %p715_p11, %p709_p8 }
 0x419   :  { %719 = shalt.err (!%p716_p12)
}
 0x41a   :  { %s720_s25 = scalar_lea.hbm %s1073_s9, 256 }
 0x41b   :  { %p721_p13 = scmp.ne.s32.totalorder %s1073_s9, %s720_s25  ;;  %p724_p0 = scmp.lt.u32.totalorder %s720_s25, %s1073_s9 }
 0x41d   :  { %p726_p1 = pnand %p724_p0, %p721_p13 }
 0x41f   :  { %729 = shalt.err (!%p726_p1)
}
 0x420   :  { %488 = dma.vmem_to_hbm [thread:$0]  %s1027_s14, 256, %s1073_s9, [#allocation6], %s737_s7, %s737_s7, %s738_s21  }
 0x483   :  { %v456_v8 = vpop.permute.xlu1 %455 }
 0x484   :  { %463 = vst [vmem:[%s1074_s10] sm:$0xff] %v456_v8 }
 0x487   :  { %v461_v9 = vpop.permute.xlu1 %460 }
 0x488   :  { %464 = vst [vmem:[%s1074_s10 + $0x8] sm:$0xff] %v461_v9 }
 0x489   :  { %730 = dma.done.wait [#allocation4], 256  }
 0x48a   :  { %731 = vsyncadd [#allocation4], 4294967040 }
 0x48b   :  { %732 = dma.done.wait [#allocation6], 256  }
 0x48c   :  { %733 = vsyncadd [#allocation6], 4294967040 }
 0x48d   :  { %499 = vsyncpa [#allocation4], 1 }
 0x48e   :  { %500 = vsyncpa [#allocation6], 1 }

</bundles_post_ra>
